<compile_context>
chip_gen: v5e
topology: v5e:2x2
jax: 0.10.0
libtpu: 0.0.40
codegen_flags: <defaults>
</compile_context>

<pallas_src>
import functools

import jax
import jax.numpy as jnp
from jax.experimental import pallas as pl
from jax.experimental.pallas import tpu as pltpu


def _cdiv(a, b):
    return -(-a // b)


def _tpu_vmem_and_cores():
    """Best-effort generation query: (VMEM bytes per core, TensorCores per chip)."""
    vmem = 128 << 20  # v5e / v6e default
    try:
        info = pltpu.get_tpu_info()
        vmem = int(getattr(info, "vmem_capacity_bytes", vmem) or vmem)
    except Exception:
        pass
    # v7x is the only listed generation with 64 MiB VMEM per TC and 2 TCs/chip.
    cores = 2 if vmem <= (64 << 20) else 1
    return vmem, cores


def _layernorm_kernel(x_ref, gamma_ref, beta_ref, o_ref, *, eps, n_valid):
    x = x_ref[...].astype(jnp.float32)        # (row_tile, feat_p)
    g = gamma_ref[...].astype(jnp.float32)    # (1, feat_p)
    b = beta_ref[...].astype(jnp.float32)     # (1, feat_p)

    feat_p = x.shape[-1]
    pad_lanes = feat_p - n_valid

    # Padded feature lanes (if any) are guaranteed zero-filled by the wrapper,
    # so the unmasked row sum already equals the sum over valid lanes.
    mean = jnp.sum(x, axis=-1, keepdims=True) * (1.0 / n_valid)
    centered = x - mean
    sq_sum = jnp.sum(centered * centered, axis=-1, keepdims=True)
    if pad_lanes:
        # Each padded lane contributes (0 - mean)^2; remove it in closed form
        # instead of iota + select masking (saves ~3 VPU passes over the tile).
        sq_sum = sq_sum - float(pad_lanes) * (mean * mean)

    # torch.std default is unbiased: divide by (N - 1).
    var_unbiased = sq_sum * (1.0 / (n_valid - 1))
    std = jnp.sqrt(var_unbiased)
    # Per-row reciprocal of (std + eps); applied to a (row_tile, 1) column so
    # approx=False costs nothing measurable and keeps the 1e-5 tolerance.
    inv = pl.reciprocal(std + eps, approx=False)
    o_ref[...] = (centered * inv * g + b).astype(o_ref.dtype)


def layer_norm(x, gamma, beta, eps=1e-6, *, target_block_bytes=None):
    """x: (rows, features); gamma, beta: (features,). Normalizes over last axis."""
    rows, feat = x.shape
    # NOTE: feat == 1 gives NaN via (N-1)==0, exactly like torch.std on 1 element.
    assert feat >= 2, "LayerNorm over a single feature is undefined (N-1 == 0)"

    itemsize = jnp.dtype(x.dtype).itemsize
    # Sublane packing: 8 rows/vreg for 32-bit, 16 for bf16/fp16, 32 for 8-bit.
    sub = {1: 32, 2: 16}.get(itemsize, 8)

    vmem_cap, num_cores = _tpu_vmem_and_cores()
    if target_block_bytes is None:
        # 128 MiB parts (v5e/v6e): ~4 MiB x-blocks; 64 MiB parts (v7x): ~3 MiB.
        target_block_bytes = (4 << 20) if vmem_cap > (100 << 20) else (3 << 20)

    # Lane-dense feature dim: pad to a multiple of 128 only when needed.
    feat_p = _cdiv(feat, 128) * 128 if feat % 128 else feat

    # Row tile: largest sublane-aligned tile whose x-block fits the target.
    rows_aligned = _cdiv(rows, sub) * sub
    max_rows_by_vmem = max(
        sub, (target_block_bytes // max(1, feat_p * itemsize)) // sub * sub
    )
    row_tile = int(min(max_rows_by_vmem, rows_aligned))
    # TODO(synk): add a feature-axis tiling fallback (second "arbitrary" grid
    # axis with running moments) for extremely wide feature dims where even an
    # 8-row block exceeds the scoped-VMEM budget.

    # v7x (2 TCs/chip): keep the step count even (>= 2) so both cores get work.
    if num_cores == 2:
        steps = _cdiv(rows, row_tile)
        if steps % 2 == 1 and rows > sub:
            row_tile = max(sub, _cdiv(_cdiv(rows, steps + 1), sub) * sub)

    # Last block may be partial; rows are never padded (rows are independent,
    # so garbage edge rows never land in valid output).
    grid = (_cdiv(rows, row_tile),)

    # Only the feature axis is ever padded, and with zeros (the kernel relies
    # on zero-filled padded lanes for the unmasked mean).
    xp, gp, bp = x, gamma, beta
    if feat_p != feat:
        xp = jnp.pad(x, ((0, 0), (0, feat_p - feat)))
        gp = jnp.pad(gamma, (0, feat_p - feat))
        bp = jnp.pad(beta, (0, feat_p - feat))
    gp = gp.reshape(1, feat_p)
    bp = bp.reshape(1, feat_p)

    # VMEM budget: double-buffered in + out blocks, f32 compute temps,
    # gamma/beta, and slack.  Cap generation-aware (96 MiB on 128 MiB parts,
    # ~48 MiB on v7x's 64 MiB), never below 16 MiB.
    block_bytes = row_tile * feat_p * itemsize
    f32_block = row_tile * feat_p * 4
    needed = 4 * block_bytes + 4 * f32_block + 2 * feat_p * 4 + (2 << 20)
    vmem_ceiling = max(16 << 20, min(96 << 20, vmem_cap - (16 << 20)))
    vmem_limit = int(min(vmem_ceiling, max(16 << 20, needed)))

    kernel = functools.partial(_layernorm_kernel, eps=eps, n_valid=feat)

    out_p = pl.pallas_call(
        kernel,
        out_shape=jax.ShapeDtypeStruct((rows, feat_p), x.dtype),
        grid_spec=pl.GridSpec(
            grid=grid,
            in_specs=[
                pl.BlockSpec((row_tile, feat_p), lambda i: (i, 0)),
                # Constant index_map: gamma/beta stay resident, not re-DMA'd.
                pl.BlockSpec((1, feat_p), lambda i: (0, 0)),
                pl.BlockSpec((1, feat_p), lambda i: (0, 0)),
            ],
            out_specs=pl.BlockSpec((row_tile, feat_p), lambda i: (i, 0)),
        ),
        compiler_params=pltpu.CompilerParams(
            dimension_semantics=("parallel",),
            vmem_limit_bytes=vmem_limit,
        ),
    )(xp, gp, bp)

    if feat_p != feat:
        out_p = out_p[:, :feat]
    return out_p


def _reference(x, gamma, beta, eps=1e-6):
    x32 = x.astype(jnp.float32)
    mean = jnp.mean(x32, axis=-1, keepdims=True)
    n = x32.shape[-1]
    var_unbiased = jnp.sum((x32 - mean) ** 2, axis=-1, keepdims=True) / (n - 1)
    std = jnp.sqrt(var_unbiased)
    return (gamma * (x32 - mean) / (std + eps) + beta).astype(x.dtype)


if __name__ == "__main__":
    key = jax.random.PRNGKey(0)
    batch, hidden = 8, 32

    x = jax.random.normal(key, (batch, hidden), dtype=jnp.float32)

    # nn.Parameter(torch.ones(features)) / torch.zeros(features)
    gamma = jnp.ones((hidden,), dtype=jnp.float32)
    beta = jnp.zeros((hidden,), dtype=jnp.float32)

    out = layer_norm(x, gamma, beta, eps=1e-6)
    out = jax.block_until_ready(out)

    ref = _reference(x, gamma, beta, eps=1e-6)
    assert out.shape == x.shape and out.dtype == x.dtype
    assert jnp.allclose(out, ref, atol=1e-5, rtol=1e-5), "mismatch vs reference"

    print("KERNEL_OK")
</pallas_src>

<mosaic_0001>
module attributes {stable_mosaic.version = 11 : i64} {
  func.func @_layernorm_kernel(%arg0: i32, %arg1: memref<8x128xf32, #tpu.memory_space<vmem>>, %arg2: memref<1x128xf32, #tpu.memory_space<vmem>>, %arg3: memref<1x128xf32, #tpu.memory_space<vmem>>, %arg4: memref<8x128xf32, #tpu.memory_space<vmem>>) attributes {dimension_semantics = [#tpu.dimension_semantics<parallel>], iteration_bounds = array<i64: 1>, scalar_prefetch = 0 : i64, scratch_operands = 0 : i64, tpu.core_type = #tpu.core_type<tc>, window_params = [{transform_indices = @transform_0, window_bounds = array<i64: 8, 128>}, {pipeline_mode = #tpu.pipeline_mode<synchronous>, transform_indices = @transform_1, window_bounds = array<i64: 1, 128>}, {pipeline_mode = #tpu.pipeline_mode<synchronous>, transform_indices = @transform_2, window_bounds = array<i64: 1, 128>}, {transform_indices = @transform_3, window_bounds = array<i64: 8, 128>}]} {
    %c0 = arith.constant 0 : index
    %c0_0 = arith.constant 0 : index
    %0 = vector.load %arg1[%c0, %c0_0] : memref<8x128xf32, #tpu.memory_space<vmem>>, vector<8x128xf32>
    %c0_1 = arith.constant 0 : index
    %c0_2 = arith.constant 0 : index
    %1 = vector.load %arg2[%c0_1, %c0_2] : memref<1x128xf32, #tpu.memory_space<vmem>>, vector<1x128xf32>
    %c0_3 = arith.constant 0 : index
    %c0_4 = arith.constant 0 : index
    %2 = vector.load %arg3[%c0_3, %c0_4] : memref<1x128xf32, #tpu.memory_space<vmem>>, vector<1x128xf32>
    %cst = arith.constant dense<0.000000e+00> : vector<8xf32>
    %3 = vector.multi_reduction <add>, %0, %cst [1] : vector<8x128xf32> to vector<8xf32>
    %4 = vector.shape_cast %3 : vector<8xf32> to vector<8x1xf32>
    %cst_5 = arith.constant 3.125000e-02 : f32
    %5 = vector.broadcast %cst_5 : f32 to vector<8x1xf32>
    %6 = arith.mulf %4, %5 : vector<8x1xf32>
    %7 = vector.broadcast %6 : vector<8x1xf32> to vector<8x128xf32>
    %8 = arith.subf %0, %7 : vector<8x128xf32>
    %9 = arith.mulf %8, %8 : vector<8x128xf32>
    %cst_6 = arith.constant dense<0.000000e+00> : vector<8xf32>
    %10 = vector.multi_reduction <add>, %9, %cst_6 [1] : vector<8x128xf32> to vector<8xf32>
    %11 = vector.shape_cast %10 : vector<8xf32> to vector<8x1xf32>
    %12 = arith.mulf %6, %6 : vector<8x1xf32>
    %cst_7 = arith.constant 9.600000e+01 : f32
    %13 = vector.broadcast %cst_7 : f32 to vector<8x1xf32>
    %14 = arith.mulf %13, %12 : vector<8x1xf32>
    %15 = arith.subf %11, %14 : vector<8x1xf32>
    %cst_8 = arith.constant 0.0322580636 : f32
    %16 = vector.broadcast %cst_8 : f32 to vector<8x1xf32>
    %17 = arith.mulf %15, %16 : vector<8x1xf32>
    %18 = math.sqrt %17 : vector<8x1xf32>
    %cst_9 = arith.constant 9.99999997E-7 : f32
    %19 = vector.broadcast %cst_9 : f32 to vector<8x1xf32>
    %20 = arith.addf %18, %19 : vector<8x1xf32>
    %21 = tpu.reciprocal %20 : vector<8x1xf32> -> vector<8x1xf32>
    %22 = vector.broadcast %21 : vector<8x1xf32> to vector<8x128xf32>
    %23 = arith.mulf %8, %22 : vector<8x128xf32>
    %24 = vector.broadcast %1 : vector<1x128xf32> to vector<8x128xf32>
    %25 = arith.mulf %23, %24 : vector<8x128xf32>
    %26 = vector.broadcast %2 : vector<1x128xf32> to vector<8x128xf32>
    %27 = arith.addf %25, %26 : vector<8x128xf32>
    %c0_10 = arith.constant 0 : index
    %c0_11 = arith.constant 0 : index
    %28 = vector.load %arg4[%c0_10, %c0_11] : memref<8x128xf32, #tpu.memory_space<vmem>>, vector<8x128xf32>
    tpu.vector_store %arg4[%c0_10, %c0_11], %27 {strides = array<i32>} : memref<8x128xf32, #tpu.memory_space<vmem>>, vector<8x128xf32>,
    return
  }
  func.func @transform_0(%arg0: i32) -> (i32, i32) {
    %c0_i32 = arith.constant 0 : i32
    %c0_i32_0 = arith.constant 0 : i32
    return %arg0, %c0_i32 : i32, i32
  }
  func.func @transform_1(%arg0: i32) -> (i32, i32) {
    %c0_i32 = arith.constant 0 : i32
    %c0_i32_0 = arith.constant 0 : i32
    %c0_i32_1 = arith.constant 0 : i32
    return %c0_i32, %c0_i32_0 : i32, i32
  }
  func.func @transform_2(%arg0: i32) -> (i32, i32) {
    %c0_i32 = arith.constant 0 : i32
    %c0_i32_0 = arith.constant 0 : i32
    %c0_i32_1 = arith.constant 0 : i32
    return %c0_i32, %c0_i32_0 : i32, i32
  }
  func.func @transform_3(%arg0: i32) -> (i32, i32) {
    %c0_i32 = arith.constant 0 : i32
    %c0_i32_0 = arith.constant 0 : i32
    return %arg0, %c0_i32 : i32, i32
  }
}

</mosaic_0001>

<bundles_post_ra>
// kernel: tpu_custom_call.1
= control target key start
LH: loop header
LB: loop body
LE: loop exit
PB: predicated region body
PF: predicated region fallthrough
CT: control target
= control target key end

     0   :  { %8 = vsyncpa [#allocation3], 0  ;;  %s234_s0 = inlined_call_operand.hbm [shape: f32[8,128], index: 0, kind: input, shape index: {}]   ;;  %s235_s1 = inlined_call_operand.hbm [shape: f32[1,128], index: 1, kind: input, shape index: {}]   ;;  %s236_s2 = inlined_call_operand.vmem [shape: f32[1,128], index: 2, kind: input, shape index: {}]   ;;  %s237_s3 = inlined_call_operand.hbm [shape: f32[8,128], index: 3, kind: output, shape index: {}]  }
   0x1   :  { %9 = vsyncpa [#allocation6], 0 }
   0x2   :  { %10 = vsyncpa [#allocation4], 0  ;;  %s16_s14 = sshll.u32 %s234_s0, 4  ;;  %s199_s15 = smov [#allocation2]   ;;  %s17_s14 = int_to_ptr.hbm [resolvable:$true] %s16_s14 }
   0x3   :  { %s18_s16 = sshll.u32 %s199_s15, 4  ;;  %s27_s19 = sshll.u32 %s235_s1, 4  ;;  %s19_s16 = int_to_ptr.vmem [resolvable:$true] %s18_s16  ;;  %s28_s19 = int_to_ptr.hbm [resolvable:$true] %s27_s19 }
   0x4   :  { %21 = dma.hbm_to_vmem [thread:$0]  %s17_s14, 128, %s19_s16, [#allocation3]  }
   0x5   :  { %s200_s20 = smov [#allocation5]  }
   0x6   :  { %s29_s21 = sshll.u32 %s200_s20, 4  ;;  %s30_s21 = int_to_ptr.vmem [resolvable:$true] %s29_s21 }
   0x7   :  { %32 = dma.hbm_to_vmem [thread:$0]  %s28_s19, 16, %s30_s21, [#allocation6]  }
   0x8   :  { %193 = dma.done.wait [#allocation3], 128  }
   0x9   :  { %194 = vsyncadd [#allocation3], 4294967168 }
   0xa   :  { %195 = dma.done.wait [#allocation6], 16  }
   0xb   :  { %196 = vsyncadd [#allocation6], 4294967280  ;;  %v43_v0 = vld [vmem:[#allocation2] sm:$0xff]  ;;  %v115_v30 = vld [vmem:[#allocation5] ss:$0 sm:$0xff]  ;;  %s201_s22 = smov [#allocation7]  }
   0xc   :  { %46 = vadd.xlane.f32.xlu0 %v43_v0  ;;  %v116_v33 = vld [vmem:[%s236_s2] ss:$0 sm:$0xff]  ;;  %s99_s23 = sshll.u32 %s201_s22, 4  ;;  %s101_s26 = sshll.u32 %s237_s3, 4  ;;  %s100_s23 = int_to_ptr.vmem [resolvable:$true] %s99_s23  ;;  %s102_s26 = int_to_ptr.hbm [resolvable:$true] %s101_s26 }
  0x7f   :  { %v47_v1 = vpop.xlane.xlu0 %46 }
  0x80   :  { %v48_v2 = vmul.f32 0.03125, %v47_v1 }
  0x82   :  { %v49_v3 = vsub.f32 %v43_v0, %v48_v2  ;;  %v53_v5 = vmul.f32 %v48_v2, %v48_v2 }
  0x84   :  { %v50_v4 = vmul.f32 %v49_v3, %v49_v3  ;;  %v54_v6 = vmul.f32 96.0, %v53_v5 }
  0x86   :  { %51 = vadd.xlane.f32.xlu0 %v50_v4 }
  0xf9   :  { %v52_v7 = vpop.xlane.xlu0 %51 }
  0xfa   :  { %v55_v8 = vsub.f32 %v52_v7, %v54_v6 }
  0xfc   :  { %v56_v9 = vmul.f32 0.032258064, %v55_v8 }
  0xfe   :  { %117 = vrsqrt.f32 %v56_v9  ;;  %vm64_vm0 = vcmp.eq.f32.partialorder %v56_v9, inf  ;;  %v67_v17 = vand.u32 2147483648, %v56_v9  ;;  %vm66_vm1 = vcmp.eq.f32.partialorder %v56_v9, 0.0 }
 0x104   :  { %v118_v10 = vpop.eup %117 }
 0x105   :  { %v58_v11 = vmul.f32 %v118_v10, %v56_v9 }
 0x107   :  { %v59_v12 = vmul.f32 %v118_v10, %v58_v11 }
 0x109   :  { %v60_v13 = vmul.f32 0.5, %v59_v12 }
 0x10b   :  { %v61_v14 = vsub.f32 1.5, %v60_v13 }
 0x10d   :  { %v62_v15 = vmul.f32 %v118_v10, %v61_v14 }
 0x10f   :  { %v63_v16 = vmul.f32 %v62_v15, %v56_v9 }
 0x111   :  { %v65_v18 = vsel %vm64_vm0, %v56_v9, %v63_v16 }
 0x112   :  { %v68_v19 = vsel %vm66_vm1, %v67_v17, %v65_v18 }
 0x113   :  { %v69_v20 = vadd.f32 1e-06, %v68_v19 }
 0x115   :  { %119 = vrcp.f32 %v69_v20  ;;  %v81_v24 = vand.u32 2147483648, %v69_v20  ;;  %v79_v26 = vand.u32 2147483647, %v69_v20  ;;  %vm75_vm3 = vweird.f32 %v69_v20 }
 0x117   :  { %v82_v28 = vor.u32 1.1754944e-38, %v81_v24  ;;  %vm80_vm5 = vcmp.eq.f32.partialorder %v79_v26, 8.507059e+37 }
 0x11b   :  { %v120_v21 = vpop.eup %119 }
 0x11c   :  { %v71_v22 = vmul.f32 %v120_v21, %v69_v20  ;;  %vm76_vm2 = vweird.f32 %v120_v21 }
 0x11d   :  { %vm77_vm4 = vmor %vm75_vm3, %vm76_vm2 }
 0x11e   :  { %v72_v23 = vsub.f32 1.0, %v71_v22 }
 0x120   :  { %v73_v25 = vmul.f32 %v120_v21, %v72_v23 }
 0x122   :  { %v74_v27 = vadd.f32 %v120_v21, %v73_v25 }
 0x124   :  { %v78_v29 = vsel %vm77_vm4, %v120_v21, %v74_v27 }
 0x125   :  { %v83_v31 = vsel %vm80_vm5, %v82_v28, %v78_v29 }
 0x126   :  { %v84_v32 = vmul.f32 %v83_v31, %v49_v3 }
 0x128   :  { %v88_v34 = vmul.f32 %v115_v30, %v84_v32 }
 0x12a   :  { %v92_v35 = vadd.f32 %v116_v33, %v88_v34 }
 0x12c   :  { %93 = vst [vmem:[#allocation7] sm:$0xff] %v92_v35 }
 0x12d   :  { %104 = dma.vmem_to_hbm [thread:$0]  %s100_s23, 128, %s102_s26, [#allocation4]  }
 0x12e   :  { %197 = dma.done.wait [#allocation4], 128  }
 0x12f   :  { %198 = vsyncadd [#allocation4], 4294967168 }
 0x130   :  { %109 = vsyncpa [#allocation3], 1 }
 0x131   :  { %110 = vsyncpa [#allocation6], 1 }
 0x132   :  { %111 = vsyncpa [#allocation4], 1 }

</bundles_post_ra>
